<compile_context>
chip_gen: v7x
topology: tpu7x:2x2x1
jax: 0.10.0
libtpu: 0.0.40
codegen_flags: <defaults>
</compile_context>

<pallas_src>
import jax
import jax.numpy as jnp
from jax.experimental import pallas as pl
from jax.experimental.pallas import tpu as pltpu


def _onehot_gather_kernel(idx_ref, x_ref, o_ref):
    """Select `chunk` rows of x[b] via a one-hot MXU matmul.

    idx_ref : VMEM (1, chunk, 1)      int32   -- source-row index per output row
    x_ref   : VMEM (1, L_total, D)    x.dtype -- full token slice for batch b
    o_ref   : VMEM (1, chunk, D)      x.dtype -- gathered output rows
    """
    chunk = idx_ref.shape[1]
    l_total = x_ref.shape[1]

    idx = idx_ref[0]                                              # (chunk, 1) int32
    cols = jax.lax.broadcasted_iota(jnp.int32, (chunk, l_total), 1)
    one_hot = (cols == idx).astype(x_ref.dtype)                   # (chunk, L_total)

    # Exact row selection on the MXU (1.0 * x_row + 0.0 * rest, f32 accumulate).
    o_ref[0] = jnp.dot(
        one_hot, x_ref[0], preferred_element_type=jnp.float32
    ).astype(o_ref.dtype)


def patch_dropout(
    x,
    key,
    *,
    prob: float = 0.5,
    num_prefix_tokens: int = 1,
    ordered: bool = False,
    return_indices: bool = False,
    training: bool = True,
    row_chunk: int = 256,
):
    assert 0 <= prob < 1.0
    if (not training) or prob == 0.0:
        return (x, None) if return_indices else x

    B, L_total, D = x.shape
    P = num_prefix_tokens
    L = L_total - P
    num_keep = max(1, int(L * (1.0 - prob)))
    n_rows = P + num_keep

    # --- index generation (cheap glue, plain JAX) -----------------------------
    # torch: argsort(randn(B, L))[:, :num_keep]  == indices of the num_keep
    # smallest noise values, in ascending-value order.  top_k(-noise, k) yields
    # exactly that at O(L*k) cost instead of a full sort.
    noise = jax.random.normal(key, (B, L), dtype=jnp.float32)
    _, keep_indices = jax.lax.top_k(-noise, num_keep)
    if ordered:
        keep_indices = jnp.sort(keep_indices, axis=-1)
    keep_indices = keep_indices.astype(jnp.int32)

    # Fold prefix rows into one uniform gather-index list.
    if P > 0:
        prefix_idx = jnp.broadcast_to(jnp.arange(P, dtype=jnp.int32), (B, P))
        gather_idx = jnp.concatenate([prefix_idx, keep_indices + P], axis=-1)
    else:
        gather_idx = keep_indices

    # --- destination-row chunking ---------------------------------------------
    def _round_up(a, m):
        return (a + m - 1) // m * m

    chunk = min(row_chunk, _round_up(n_rows, 8))        # multiple of 8 (sublanes)
    n_rows_pad = _round_up(n_rows, chunk)
    if n_rows_pad != n_rows:
        # Pad with index 0 (a valid row); padded output rows are sliced off below.
        pad = jnp.zeros((B, n_rows_pad - n_rows), dtype=jnp.int32)
        gather_idx = jnp.concatenate([gather_idx, pad], axis=-1)
    idx3 = gather_idx[..., None]                        # (B, n_rows_pad, 1)
    n_chunks = n_rows_pad // chunk

    # --- VMEM budget (double-buffered blocks; x is resident across chunks) ----
    itemsize = x.dtype.itemsize
    vmem_need = (
        2 * L_total * D * itemsize      # x block
        + 2 * chunk * D * itemsize      # output block
        + 2 * chunk * 4                 # index block
        + (4 << 20)                     # slack for compiler scratch
    )
    vmem_limit = int(min(max(vmem_need, 32 << 20), 100 << 20))

    out = pl.pallas_call(
        _onehot_gather_kernel,
        out_shape=jax.ShapeDtypeStruct((B, n_rows_pad, D), x.dtype),
        grid_spec=pltpu.PrefetchScalarGridSpec(
            num_scalar_prefetch=0,
            grid=(B, n_chunks),
            in_specs=[
                pl.BlockSpec((1, chunk, 1), lambda b, c: (b, c, 0)),       # indices
                pl.BlockSpec((1, L_total, D), lambda b, c: (b, 0, 0)),     # x[b] (resident)
            ],
            out_specs=pl.BlockSpec((1, chunk, D), lambda b, c: (b, c, 0)),
        ),
        compiler_params=pltpu.CompilerParams(
            # batch axis and destination-row-chunk axis are both independent:
            # lets the two v7x TensorCores load-balance even for B == 1 / odd B.
            dimension_semantics=("parallel", "parallel"),
            vmem_limit_bytes=vmem_limit,
        ),
    )(idx3, x)

    if n_rows_pad != n_rows:
        out = out[:, :n_rows]

    if return_indices:
        return out, keep_indices
    return out


if __name__ == "__main__":
    key = jax.random.PRNGKey(0)
    k_x, k_drop = jax.random.split(key)

    B, P, L, D = 2, 1, 16, 256  # batch, prefix tokens, patch tokens, hidden
    x = jax.random.normal(k_x, (B, P + L, D), dtype=jnp.float32)
    num_keep = max(1, int(L * 0.5))

    # Training path: exercises the streaming one-hot-gather kernel.
    out, keep_indices = patch_dropout(
        x, k_drop, prob=0.5, num_prefix_tokens=P,
        ordered=False, return_indices=True, training=True,
    )
    out = jax.block_until_ready(out)

    ref_patches = jnp.take_along_axis(x[:, P:], keep_indices[..., None], axis=1)
    ref = jnp.concatenate([x[:, :P], ref_patches], axis=1)
    assert out.shape == (B, P + num_keep, D)
    assert jnp.allclose(out, ref), "Pallas PatchDropout mismatch vs reference"

    # Ordered path.
    out_o, idx_o = patch_dropout(
        x, k_drop, prob=0.5, num_prefix_tokens=P,
        ordered=True, return_indices=True, training=True,
    )
    out_o = jax.block_until_ready(out_o)
    ref_o = jnp.concatenate(
        [x[:, :P], jnp.take_along_axis(x[:, P:], idx_o[..., None], axis=1)], axis=1
    )
    assert bool(jnp.all(idx_o[:, 1:] >= idx_o[:, :-1]))
    assert jnp.allclose(out_o, ref_o), "ordered PatchDropout mismatch"

    # No-prefix path.
    out_np = patch_dropout(
        x[:, 1:], k_drop, prob=0.5, num_prefix_tokens=0,
        return_indices=False, training=True,
    )
    out_np = jax.block_until_ready(out_np)
    assert out_np.shape == (B, num_keep, D)

    # Eval path: identity.
    out_eval = patch_dropout(x, k_drop, prob=0.5, training=False)
    assert jnp.allclose(out_eval, x)

    print("KERNEL_OK")
</pallas_src>

<mosaic_0001>
module attributes {stable_mosaic.version = 11 : i64} {
  func.func @_onehot_gather_kernel(%arg0: i32, %arg1: i32, %arg2: memref<1x16x1xi32, #tpu.memory_space<vmem>>, %arg3: memref<1x17x256xf32, #tpu.memory_space<vmem>>, %arg4: memref<1x16x256xf32, #tpu.memory_space<vmem>>) attributes {dimension_semantics = [#tpu.dimension_semantics<parallel>, #tpu.dimension_semantics<parallel>], iteration_bounds = array<i64: 2, 1>, scalar_prefetch = 0 : i64, scratch_operands = 0 : i64, tpu.core_type = #tpu.core_type<tc>, window_params = [{transform_indices = @transform_0, window_bounds = array<i64: 1, 16, 1>}, {transform_indices = @transform_1, window_bounds = array<i64: 1, 17, 256>}, {transform_indices = @transform_2, window_bounds = array<i64: 1, 16, 256>}]} {
    %c0 = arith.constant 0 : index
    %c0_0 = arith.constant 0 : index
    %c0_1 = arith.constant 0 : index
    %0 = vector.load %arg2[%c0, %c0_0, %c0_1] : memref<1x16x1xi32, #tpu.memory_space<vmem>>, vector<1x16x1xi32>
    %1 = vector.shape_cast %0 : vector<1x16x1xi32> to vector<16x1xi32>
    %2 = tpu.iota {dimensions = array<i32: 1>} : vector<16x17xi32>
    %3 = vector.broadcast %1 : vector<16x1xi32> to vector<16x17xi32>
    %4 = arith.cmpi eq, %2, %3 : vector<16x17xi32>
    %5 = arith.extui %4 : vector<16x17xi1> to vector<16x17xi32>
    %6 = arith.sitofp %5 : vector<16x17xi32> to vector<16x17xf32>
    %c0_2 = arith.constant 0 : index
    %c0_3 = arith.constant 0 : index
    %c0_4 = arith.constant 0 : index
    %7 = vector.load %arg3[%c0_2, %c0_3, %c0_4] : memref<1x17x256xf32, #tpu.memory_space<vmem>>, vector<1x17x256xf32>
    %8 = vector.shape_cast %7 : vector<1x17x256xf32> to vector<17x256xf32>
    %cst = arith.constant dense<0.000000e+00> : vector<16x256xf32>
    %9 = tpu.matmul %6, %8, %cst {dimension_numbers = #tpu.dot_dimension_numbers<[1], [0], [0], [1], [0, 0, 1, 1], [], []>} : vector<16x17xf32>, vector<17x256xf32>, vector<16x256xf32> -> vector<16x256xf32>
    %c0_5 = arith.constant 0 : index
    %c0_6 = arith.constant 0 : index
    %c0_7 = arith.constant 0 : index
    %10 = vector.load %arg4[%c0_5, %c0_6, %c0_7] : memref<1x16x256xf32, #tpu.memory_space<vmem>>, vector<1x16x256xf32>
    %11 = vector.shape_cast %10 : vector<1x16x256xf32> to vector<16x256xf32>
    %12 = vector.shape_cast %9 : vector<16x256xf32> to vector<1x16x256xf32>
    tpu.vector_store %arg4[%c0_5, %c0_6, %c0_7], %12 {strides = array<i32>} : memref<1x16x256xf32, #tpu.memory_space<vmem>>, vector<1x16x256xf32>,
    return
  }
  func.func @transform_0(%arg0: i32, %arg1: i32) -> (i32, i32, i32) {
    %c0_i32 = arith.constant 0 : i32
    %c0_i32_0 = arith.constant 0 : i32
    return %arg0, %arg1, %c0_i32 : i32, i32, i32
  }
  func.func @transform_1(%arg0: i32, %arg1: i32) -> (i32, i32, i32) {
    %c0_i32 = arith.constant 0 : i32
    %c0_i32_0 = arith.constant 0 : i32
    %c0_i32_1 = arith.constant 0 : i32
    return %arg0, %c0_i32, %c0_i32_0 : i32, i32, i32
  }
  func.func @transform_2(%arg0: i32, %arg1: i32) -> (i32, i32, i32) {
    %c0_i32 = arith.constant 0 : i32
    %c0_i32_0 = arith.constant 0 : i32
    return %arg0, %arg1, %c0_i32 : i32, i32, i32
  }
}

</mosaic_0001>

<bundles_post_ra>
// kernel: tpu_custom_call.1
= control target key start
LH: loop header
LB: loop body
LE: loop exit
PB: predicated region body
PF: predicated region fallthrough
CT: control target
= control target key end

     0   :  { %7 = vsyncpa [#allocation3], 0  ;;  %s727_s0 = inlined_call_operand.vmem [shape: s32[2,16,1], index: 0, kind: input, shape index: {}]   ;;  %s728_s1 = inlined_call_operand.vmem [shape: f32[2,17,256], index: 1, kind: input, shape index: {}]   ;;  %s729_s2 = inlined_call_operand.hbm [shape: f32[2,16,256], index: 2, kind: output, shape index: {}]  }
   0x1   :  { %9 = vsyncpa [#allocation3 + $0x1], 0  ;;  %s609_s9 = smov 0   ;;  %s611_s10 = smov 0  }
   0x2   :  { %s613_s11 = smov 0   ;;  %s615_s12 = smov 0  }
   0x3   :  { %s617_s13 = smov 0   ;;  %s619_s14 = smov 0  }
   0x4 LB: > { %s418_s15 = sadd.s32 4294967295, %s587_s14   ;;  %s419_s16 = sadd.s32 4294967294, %s587_s14   ;;  %s587_s14 = sphi %s619_s14, %s15_s14   ;;  %s583_s13 = sphi %s617_s13, %s736_s13   ;;  %s579_s12 = sphi %s615_s12, %s735_s12   ;;  %s575_s11 = sphi %s613_s11, %s734_s11   ;;  %s571_s10 = sphi %s611_s10, %s733_s10   ;;  %s567_s9 = sphi %s609_s9, %s732_s9  }
   0x5   : > { %s27_s17 = sadd.s32 1, %s583_s13  ;;  %s90_s18 = sadd.s32 1, %s575_s11 }
   0x6   : > { %p29_p0 = scmp.ge.s32.totalorder %s27_s17, 2  ;;  %p100_p1 = scmp.ne.s32.totalorder %s575_s11, %s571_s10 }
   0x7   : > { %p101_p2 = scmp.eq.s32.totalorder %s418_s15, 1  ;;  %p106_p3 = scmp.ne.s32.totalorder %s571_s10, %s567_s9 }
   0x8   : > { %s738_s17 = smov (%p29_p0, %s27_s17), 0  ;;  %p107_p5 = scmp.eq.s32.totalorder %s419_s16, 1 }
   0x9   : > { %p649_p4 = por %p101_p2, %p100_p1  ;;  %s85_s20 = ssub.s32 %s583_s13, %s738_s17 }
   0xa   : > { %p422_p6 = scmp.ge.s32.totalorder %s587_s14, 1  ;;  %p88_p7 = scmp.eq.s32.totalorder %s85_s20, 0 }
   0xb   : > { %p656_p8 = por %p107_p5, %p106_p3  ;;  %p146_p9 = scmp.lt.s32.totalorder %s587_s14, 3 }
   0xc   : > { %s662_s22 = scalar_select %p88_p7, %s575_s11, %s90_s18  }
   0xd   : > { %p147_p10 = pnand %p422_p6, %p146_p9 }
   0xe   : > { %p178_p11 = scmp.lt.s32.totalorder (!%p147_p10), %s579_s12, 1  ;;  %v589_v0 = vmov (!%p147_p10), 0   ;;  %v590_v1 = vmov (!%p147_p10), 0.0   ;;  %vm222_vm0 = vcmask (!%p147_p10), 1040384   ;;  %v195_v12 = vlaneseq (!%p147_p10)  ;;  %s174_s4 = sand.u32 (!%p147_p10), 1, %s571_s10  }
   0xf   : > { %150 = sbr.rel (%p147_p10) target bundleno = 389 (0x185), region = 28  ;;  %508 = vset.pattern.permute.xlu0 (!%p147_p10), %v589_v0  ;;  %293 = vmatprep.mubr.f32.mxu0 (!%p147_p10), %v590_v1  ;;  %vm215_vm1 = vcmask (!%p147_p10), 138240   ;;  %s423_s5 = sshll.u32 (!%p147_p10), %s174_s4, 5 }
  0x10   : > { %299 = vmatprep.mubr.f32.mxu1 (!%p147_p10), %v590_v1  ;;  %v196_v13 = vand.u32 (!%p147_p10), 127, %v195_v12  ;;  %s176_s6 = scalar_lea.vmem (!%p147_p10), [#allocation2], %s423_s5  ;;  %s439_s8 = sshll.u32 (!%p147_p10), %s579_s12, 9 }
  0x11   : > { %s327_s7 = sshll.u32 (!%p147_p10), %s176_s6, 4  ;;  %s679_s18 = scalar_lea.hbm (!%p147_p10), %s729_s2, %s439_s8  ;;  %s674_s7 = int_to_ptr.vmem [resolvable:$true] %s327_s7 }
  0x12   : > { %s681_s20 = scalar_lea.sflag (!%p147_p10), [#allocation3], %s174_s4 }
  0x16   : > { %s179_s23 = scalar_select %p178_p11, %s579_s12, 1 }
  0x17   : > { %s509_s12 = scalar_lea.vmem %s674_s7, 512 }
  0x18   : > { %s438_s24 = sshll.u32 %s179_s23, 4  ;;  %s448_s25 = smul.u32 48, %s179_s23 }
  0x19   : > { %s185_s28 = scalar_lea.vmem %s727_s0, %s438_s24  ;;  %p510_p12 = scmp.ne.s32.totalorder %s674_s7, %s509_s12 }
  0x1a   : > { %s191_s3 = scalar_lea.vmem %s728_s1, %s448_s25  ;;  %v193_v2 = vld [vmem:[%s185_s28] sm:$0xff]  ;;  %v194_v6 = vld [vmem:[%s185_s28 + $0x8] sm:$0xff]  ;;  %s591_s23 = smov [#allocation2]  }
  0x1b   : > { %198 = vperm.xlu0 %508, %v193_v2   ;;  %v210_v3 = vld [vmem:[%s191_s3 + $0x8] sm:$0xff]  ;;  %v212_v4 = vld [vmem:[%s191_s3 + $0x18] sm:$0xff]  ;;  %v209_v5 = vld [vmem:[%s191_s3] sm:$0xff]  ;;  %p511_p13 = pnand %p510_p12, %p649_p4  ;;  %s513_s24 = sshll.u32 %s591_s23, 4  ;;  %s514_s24 = int_to_ptr.vmem [resolvable:$false] %s513_s24 }
  0x1c   : > { %v440_v7 = vpack.c.bf16 %v212_v4, %v210_v3  ;;  %v211_v8 = vld [vmem:[%s191_s3 + $0x10] sm:$0xff]  ;;  %v214_v10 = vld [vmem:[%s191_s3 + $0x28] sm:$0x1]  ;;  %v213_v11 = vld [vmem:[%s191_s3 + $0x20] sm:$0x1]  ;;  %s515_s25 = scalar_lea.vmem %s514_s24, 1024  ;;  %p516_p1 = scmp.lt.s32.totalorder %s674_s7, %s514_s24 }
  0x1d   : > { %v442_v9 = vpack.c.bf16 %v211_v8, %v209_v5  ;;  %p512_p0 = pneg %p511_p13  ;;  %p517_p2 = scmp.lt.s32.totalorder %s515_s25, %s509_s12 }
  0x1e   : > { %441 = vmatprep.subr.bf16.mxu0 %v440_v7  ;;  %444 = vmatprep.subr.bf16.mxu1 %v440_v7 }
  0x1f   : > { %201 = vperm.xlu0 %508, %v194_v6   ;;  %443 = vmatpush1.bf16.msra.mxu0 %v442_v9  ;;  %p518_p3 = por %p517_p2, %p516_p1 }
  0x20   : > { %429 = vmatprep.subr.msk.mxu0 %vm222_vm0, %v214_v10  ;;  %446 = vmatpush1.bf16.msra.mxu1 %v442_v9 }
  0x21   : > { %445 = vmatprep.subr.msk.mxu1 %vm222_vm0, %v214_v10  ;;  %p519_p5 = pnand %p518_p3, %p512_p0 }
  0x23   : > { %430 = vmatpush1.msk.msra.mxu0 %vm222_vm0, %v213_v11 }
  0x24   : > { %447 = vmatpush1.msk.msra.mxu1 %vm222_vm0, %v213_v11 }
  0x9a   : > { %v199_v14 = vpop.permute.xlu0 %198 }
  0x9b   : > { %vm203_vm2 = vcmp.eq.s32.totalorder %v196_v13, %v199_v14 }
  0x9c   : > { %v427_v15 = vsel %vm203_vm2, 1.0, %v590_v1 }
  0x9d   : > { %431 = vmatmul.mubr.msk.f32.vlgmr.msra.gmra.mrb[0].mxu0 %vm215_vm1, %v427_v15 }
  0x9e   : > { %v202_v16 = vpop.permute.xlu0 %201 }
  0x9f   : > { %vm204_vm3 = vcmp.eq.s32.totalorder %v196_v13, %v202_v16 }
  0xa0   : > { %v428_v17 = vsel %vm204_vm3, 1.0, %v590_v1 }
  0xa1   : > { %432 = vmatmul.mubr.msk.f32.vlgmr.msra.gmra.mrb[0].mxu1 %vm215_vm1, %v428_v17 }
 0x170   : > { %v295_v18 = vpop.f32.mrb[0].mxu0 }
 0x171   : > { %306 = vst [vmem:[%s176_s6] sm:$0xff] %v295_v18  ;;  %v297_v19 = vpop.f32.mrb[1].mxu0 }
 0x172   : > { %307 = vst [vmem:[%s176_s6 + $0x8] sm:$0xff] %v297_v19 }
 0x174   : > { %v301_v20 = vpop.f32.mrb[0].mxu1 }
 0x175   : > { %308 = vst [vmem:[%s176_s6 + $0x10] sm:$0xff] %v301_v20  ;;  %v303_v21 = vpop.f32.mrb[1].mxu1 }
 0x176   : > { %309 = vst [vmem:[%s176_s6 + $0x18] sm:$0xff] %v303_v21 }
 0x177   : > { %522 = shalt.err (!%p519_p5)
}
 0x178   : > { %s523_s26 = scalar_lea.hbm %s679_s18, 512  ;;  %s527_s29 = scalar_lea.hbm %s729_s2, 1024 }
 0x179   : > { %p524_p6 = scmp.ne.s32.totalorder %s679_s18, %s523_s26  ;;  %p528_p10 = scmp.lt.u32.totalorder %s679_s18, %s729_s2 }
 0x17a   : > { %p529_p11 = scmp.lt.u32.totalorder %s527_s29, %s523_s26  ;;  %p531_p13 = scmp.lt.u32.totalorder %s523_s26, %s679_s18 }
 0x17b   : > { %p525_p7 = pnand %p524_p6, %p649_p4 }
 0x17c   : > { %p530_p12 = por %p529_p11, %p528_p10 }
 0x17d   : > { %p526_p9 = pneg %p525_p7 }
 0x17e   : > { %p532_p0 = por %p531_p13, %p530_p12 }
 0x180   : > { %p533_p1 = pnand %p532_p0, %p526_p9 }
 0x182   : > { %536 = shalt.err (!%p533_p1)
}
 0x183   : > { %s592_s4 = smov 256   ;;  %s593_s5 = smov 16  }
 0x184   : > { %449 = dma.vmem_to_hbm [thread:$0]  (%p649_p4), %s674_s7, 512, %s679_s18, %s681_s20, %s592_s4, %s592_s4, %s593_s5  }
 0x185 PF: > { %p455_p2 = scmp.ge.s32.totalorder %s587_s14, 2  ;;  %s342_s6 = sand.u32 1, %s567_s9  }
 0x186   : > { %s343_s8 = scalar_lea.sflag [#allocation3], %s342_s6 }
 0x187   : > { %p452_p3 = pnand %p455_p2, %p656_p8 }
 0x189   : > { %562 = dma.done.wait (!%p452_p3), %s343_s8, 512  }
 0x18a   : > { %564 = vsyncadd (!%p452_p3), %s343_s8, 4294966784  ;;  %s15_s14 = sadd.s32 1, %s587_s14   ;;  %s732_s9 = smov %s571_s10 }
 0x18b   : > { %p12_p5 = scmp.ge.s32.totalorder %s15_s14, 4   ;;  %s733_s10 = smov %s575_s11 }
 0x18c   : > { %s734_s11 = smov %s662_s22  ;;  %s735_s12 = smov %s583_s13 }
 0x18d   : > { %s736_s13 = smov %s738_s17  ;;  %14 = sbr.rel (!%p12_p5) target bundleno = 4 (0x4), region = 66 }
 0x194   :  { %348 = vsyncpa [#allocation3], 1 }
 0x195   :  { %350 = vsyncpa [#allocation3 + $0x1], 1 }

</bundles_post_ra>
